<compile_context>
chip_gen: v7x
topology: tpu7x:2x2x1
jax: 0.10.0
libtpu: 0.0.40
codegen_flags: <defaults>
</compile_context>

<pallas_src>
import jax
import jax.numpy as jnp
from jax.experimental import pallas as pl
from jax.experimental.pallas import tpu as pltpu


def mlp_kernel(x_ref, w1_ref, b1_ref, w2_ref, b2_ref, w3_ref, b3_ref, out_ref):
    """One batch tile (all f32):
       h1 = relu(x @ w1 + b1)                 (MXU, f32 accum)
       h2 = relu(h1 @ w2 + b2)                (MXU, f32 accum)
       y  = sigmoid(sum(h2 * w3_row) + b3)    (VPU mul + XLU reduce + EUP)
    Output written as a lane-dense (1, TB) row.
    """
    x = x_ref[...]                                              # (TB, 225) f32

    h1 = jnp.dot(x, w1_ref[...], preferred_element_type=jnp.float32)
    h1 = jnp.maximum(h1 + b1_ref[...], 0.0)                     # (TB, 24)

    h2 = jnp.dot(h1, w2_ref[...], preferred_element_type=jnp.float32)
    h2 = jnp.maximum(h2 + b2_ref[...], 0.0)                     # (TB, 225)

    # Final layer as elementwise multiply + lane reduce (avoids N=1 matmul).
    logits = jnp.sum(h2 * w3_ref[...], axis=-1)                 # (TB,)
    y = jax.nn.sigmoid(logits + b3_ref[0, 0])                   # (TB,)
    out_ref[0, :] = y.astype(out_ref.dtype)                     # lane-dense store


def _round_up(v, m):
    return (v + m - 1) // m * m


def _cdiv(a, b):
    return -(-a // b)


def neural_network_forward(x, params, *, batch_tile=8192):
    """x: [B, 15, 15] (or already [B, 225]) float32. Returns [B, 1] float32."""
    w1, b1, w2, b2, w3, b3 = params
    B = x.shape[0]
    x_flat = x.reshape(B, -1)                                   # nn.Flatten()
    assert x_flat.shape[1] == 225
    x_flat = x_flat.astype(jnp.float32)                         # no-op for f32 inputs

    # Pad only tiny batches up to one minimal 128-row tile; larger batches are
    # streamed as-is and the last (possibly partial) tile runs past B — its
    # garbage rows are dropped by the [:B] slice below.
    if B < 128:
        x_flat = jnp.pad(x_flat, ((0, 128 - B), (0, 0)))
        B_eff = 128
    else:
        B_eff = B

    # Batch tile: multiple of 128 (lane-dense output rows), capped at
    # `batch_tile`, and sized so we get >= 2 grid steps when B allows it
    # (keeps both v7x TensorCores busy via the "parallel" batch axis).
    TB = min(batch_tile, max(128, _round_up(_cdiv(B_eff, 2), 128)))
    num_tiles = _cdiv(B_eff, TB)

    # Weights stored [in, out] (transposed vs. PyTorch nn.Linear); all f32 —
    # they're VMEM-resident (<250 KiB total) so bf16 saves no HBM traffic.
    w1c = w1.astype(jnp.float32)                                # (225, 24)
    w2c = w2.astype(jnp.float32)                                # (24, 225)
    b1_2d = b1.reshape(1, -1).astype(jnp.float32)               # (1, 24)
    b2_2d = b2.reshape(1, -1).astype(jnp.float32)               # (1, 225)
    w3_row = w3.reshape(1, -1).astype(jnp.float32)              # (1, 225)
    b3_2d = b3.reshape(1, 1).astype(jnp.float32)                # (1, 1) -> SMEM

    # Weights/biases: constant block index -> stay resident across grid steps.
    resident = lambda shape: pl.BlockSpec(shape, lambda i: (0, 0))

    rows = num_tiles * TB
    flops = 2 * rows * (225 * 24 + 24 * 225 + 225)
    bytes_accessed = (
        B_eff * 225 * 4                                # stream x (f32, one pass)
        + rows * 4                                     # output
        + (w1c.size + w2c.size + w3_row.size + b1_2d.size + b2_2d.size + 1) * 4)

    out2d = pl.pallas_call(
        mlp_kernel,
        out_shape=jax.ShapeDtypeStruct((num_tiles, TB), jnp.float32),
        grid=(num_tiles,),
        in_specs=[
            pl.BlockSpec((TB, 225), lambda i: (i, 0)),          # x tile
            resident(w1c.shape),                                # (225, 24)
            resident(b1_2d.shape),                              # (1, 24)
            resident(w2c.shape),                                # (24, 225)
            resident(b2_2d.shape),                              # (1, 225)
            resident(w3_row.shape),                             # (1, 225)
            pl.BlockSpec(memory_space=pltpu.MemorySpace.SMEM),  # b3 scalar
        ],
        out_specs=pl.BlockSpec((1, TB), lambda i: (i, 0)),      # lane-dense row
        compiler_params=pltpu.CompilerParams(
            dimension_semantics=("parallel",),                  # megacore on v7x
            vmem_limit_bytes=48 << 20),                         # v7x: 64 MiB physical
        cost_estimate=pl.CostEstimate(
            flops=flops, transcendentals=rows, bytes_accessed=bytes_accessed),
    )(x_flat, w1c, b1_2d, w2c, b2_2d, w3_row, b3_2d)

    return out2d.reshape(rows)[:B].reshape(B, 1)


def init_params(key):
    """Deterministic synthetic init matching nn.Linear shapes.
    Weights stored as [in_features, out_features] (transposed vs PyTorch)."""
    k1, k2, k3, k4, k5, k6 = jax.random.split(key, 6)

    def uniform(k, shape, fan_in):
        bound = 1.0 / jnp.sqrt(fan_in)
        return jax.random.uniform(k, shape, jnp.float32, -bound, bound)

    w1 = uniform(k1, (225, 24), 225.0)
    b1 = uniform(k2, (24,), 225.0)
    w2 = uniform(k3, (24, 225), 24.0)
    b2 = uniform(k4, (225,), 24.0)
    w3 = uniform(k5, (225, 1), 225.0)
    b3 = uniform(k6, (1,), 225.0)
    return (w1, b1, w2, b2, w3, b3)


def reference_forward(x, params):
    """Pure-JAX f32 reference for correctness checks."""
    w1, b1, w2, b2, w3, b3 = params
    h = x.reshape(x.shape[0], -1)
    h = jnp.maximum(h @ w1 + b1, 0.0)
    h = jnp.maximum(h @ w2 + b2, 0.0)
    return jax.nn.sigmoid(h @ w3 + b3)


if __name__ == "__main__":
    key = jax.random.PRNGKey(0)
    k_params, k_x, k_x2 = jax.random.split(key, 3)

    params = init_params(k_params)

    # Small batch of 15x15 "images" -> flattened to 225 features (B < 128 path).
    x = jax.random.normal(k_x, (8, 15, 15), dtype=jnp.float32)
    out = jax.block_until_ready(neural_network_forward(x, params))
    ref = reference_forward(x, params)
    assert out.shape == (8, 1)
    assert jnp.allclose(out, ref, atol=1e-4, rtol=1e-4)   # all-f32 now

    # Multi-tile grid + partial last tile (no batch padding), small tile size.
    x2 = jax.random.normal(k_x2, (300, 15, 15), dtype=jnp.float32)
    out2 = jax.block_until_ready(
        neural_network_forward(x2, params, batch_tile=128))
    ref2 = reference_forward(x2, params)
    assert out2.shape == (300, 1)
    assert jnp.allclose(out2, ref2, atol=1e-4, rtol=1e-4)

    # Default tile-size selection path (TB chosen so num_tiles >= 2).
    out3 = jax.block_until_ready(neural_network_forward(x2, params))
    assert out3.shape == (300, 1)
    assert jnp.allclose(out3, ref2, atol=1e-4, rtol=1e-4)

    print("KERNEL_OK")
</pallas_src>

<mosaic_0001>
module attributes {stable_mosaic.version = 11 : i64} {
  func.func @mlp_kernel(%arg0: i32, %arg1: memref<128x225xf32, #tpu.memory_space<vmem>>, %arg2: memref<225x24xf32, #tpu.memory_space<vmem>>, %arg3: memref<1x24xf32, #tpu.memory_space<vmem>>, %arg4: memref<24x225xf32, #tpu.memory_space<vmem>>, %arg5: memref<1x225xf32, #tpu.memory_space<vmem>>, %arg6: memref<1x225xf32, #tpu.memory_space<vmem>>, %arg7: memref<1x1xf32, #tpu.memory_space<smem>>, %arg8: memref<1x128xf32, #tpu.memory_space<vmem>>) attributes {dimension_semantics = [#tpu.dimension_semantics<parallel>], iteration_bounds = array<i64: 1>, scalar_prefetch = 0 : i64, scratch_operands = 0 : i64, tpu.core_type = #tpu.core_type<tc>, window_params = [{transform_indices = @transform_0, window_bounds = array<i64: 128, 225>}, {pipeline_mode = #tpu.pipeline_mode<synchronous>, transform_indices = @transform_1, window_bounds = array<i64: 225, 24>}, {pipeline_mode = #tpu.pipeline_mode<synchronous>, transform_indices = @transform_2, window_bounds = array<i64: 1, 24>}, {pipeline_mode = #tpu.pipeline_mode<synchronous>, transform_indices = @transform_3, window_bounds = array<i64: 24, 225>}, {pipeline_mode = #tpu.pipeline_mode<synchronous>, transform_indices = @transform_4, window_bounds = array<i64: 1, 225>}, {pipeline_mode = #tpu.pipeline_mode<synchronous>, transform_indices = @transform_5, window_bounds = array<i64: 1, 225>}, {transform_indices = @transform_6, window_bounds = array<i64: 1, 1>}, {transform_indices = @transform_7, window_bounds = array<i64: 1, 128>}]} {
    %c0 = arith.constant 0 : index
    %c0_0 = arith.constant 0 : index
    %0 = vector.load %arg1[%c0, %c0_0] : memref<128x225xf32, #tpu.memory_space<vmem>>, vector<128x225xf32>
    %c0_1 = arith.constant 0 : index
    %c0_2 = arith.constant 0 : index
    %1 = vector.load %arg2[%c0_1, %c0_2] : memref<225x24xf32, #tpu.memory_space<vmem>>, vector<225x24xf32>
    %cst = arith.constant dense<0.000000e+00> : vector<128x24xf32>
    %2 = tpu.matmul %0, %1, %cst {dimension_numbers = #tpu.dot_dimension_numbers<[1], [0], [0], [1], [0, 0, 1, 1], [], []>} : vector<128x225xf32>, vector<225x24xf32>, vector<128x24xf32> -> vector<128x24xf32>
    %c0_3 = arith.constant 0 : index
    %c0_4 = arith.constant 0 : index
    %3 = vector.load %arg3[%c0_3, %c0_4] : memref<1x24xf32, #tpu.memory_space<vmem>>, vector<1x24xf32>
    %4 = vector.broadcast %3 : vector<1x24xf32> to vector<128x24xf32>
    %5 = arith.addf %2, %4 : vector<128x24xf32>
    %cst_5 = arith.constant 0.000000e+00 : f32
    %6 = vector.broadcast %cst_5 : f32 to vector<128x24xf32>
    %7 = arith.maximumf %5, %6 : vector<128x24xf32>
    %c0_6 = arith.constant 0 : index
    %c0_7 = arith.constant 0 : index
    %8 = vector.load %arg4[%c0_6, %c0_7] : memref<24x225xf32, #tpu.memory_space<vmem>>, vector<24x225xf32>
    %cst_8 = arith.constant dense<0.000000e+00> : vector<128x225xf32>
    %9 = tpu.matmul %7, %8, %cst_8 {dimension_numbers = #tpu.dot_dimension_numbers<[1], [0], [0], [1], [0, 0, 1, 1], [], []>} : vector<128x24xf32>, vector<24x225xf32>, vector<128x225xf32> -> vector<128x225xf32>
    %c0_9 = arith.constant 0 : index
    %c0_10 = arith.constant 0 : index
    %10 = vector.load %arg5[%c0_9, %c0_10] : memref<1x225xf32, #tpu.memory_space<vmem>>, vector<1x225xf32>
    %11 = vector.broadcast %10 : vector<1x225xf32> to vector<128x225xf32>
    %12 = arith.addf %9, %11 : vector<128x225xf32>
    %cst_11 = arith.constant 0.000000e+00 : f32
    %13 = vector.broadcast %cst_11 : f32 to vector<128x225xf32>
    %14 = arith.maximumf %12, %13 : vector<128x225xf32>
    %c0_12 = arith.constant 0 : index
    %c0_13 = arith.constant 0 : index
    %15 = vector.load %arg6[%c0_12, %c0_13] : memref<1x225xf32, #tpu.memory_space<vmem>>, vector<1x225xf32>
    %16 = vector.broadcast %15 : vector<1x225xf32> to vector<128x225xf32>
    %17 = arith.mulf %14, %16 : vector<128x225xf32>
    %cst_14 = arith.constant dense<0.000000e+00> : vector<128xf32>
    %18 = vector.multi_reduction <add>, %17, %cst_14 [1] : vector<128x225xf32> to vector<128xf32>
    %c0_15 = arith.constant 0 : index
    %c0_16 = arith.constant 0 : index
    %19 = memref.load %arg7[%c0_15, %c0_16] : memref<1x1xf32, #tpu.memory_space<smem>>
    %20 = vector.broadcast %19 : f32 to vector<128xf32>
    %21 = arith.addf %18, %20 : vector<128xf32>
    %22 = arith.negf %21 : vector<128xf32>
    %23 = math.exp %22 : vector<128xf32>
    %cst_17 = arith.constant 1.000000e+00 : f32
    %24 = vector.broadcast %cst_17 : f32 to vector<128xf32>
    %25 = arith.addf %24, %23 : vector<128xf32>
    %26 = arith.divf %24, %25 : vector<128xf32>
    %c0_18 = arith.constant 0 : index
    %c0_19 = arith.constant 0 : index
    %27 = vector.load %arg8[%c0_18, %c0_19] : memref<1x128xf32, #tpu.memory_space<vmem>>, vector<1x128xf32>
    %28 = vector.shape_cast %27 : vector<1x128xf32> to vector<128xf32>
    %29 = vector.shape_cast %26 : vector<128xf32> to vector<1x128xf32>
    tpu.vector_store %arg8[%c0_18, %c0_19], %29 {strides = array<i32>} : memref<1x128xf32, #tpu.memory_space<vmem>>, vector<1x128xf32>,
    return
  }
  func.func @transform_0(%arg0: i32) -> (i32, i32) {
    %c0_i32 = arith.constant 0 : i32
    %c0_i32_0 = arith.constant 0 : i32
    return %arg0, %c0_i32 : i32, i32
  }
  func.func @transform_1(%arg0: i32) -> (i32, i32) {
    %c0_i32 = arith.constant 0 : i32
    %c0_i32_0 = arith.constant 0 : i32
    %c0_i32_1 = arith.constant 0 : i32
    return %c0_i32, %c0_i32_0 : i32, i32
  }
  func.func @transform_2(%arg0: i32) -> (i32, i32) {
    %c0_i32 = arith.constant 0 : i32
    %c0_i32_0 = arith.constant 0 : i32
    %c0_i32_1 = arith.constant 0 : i32
    return %c0_i32, %c0_i32_0 : i32, i32
  }
  func.func @transform_3(%arg0: i32) -> (i32, i32) {
    %c0_i32 = arith.constant 0 : i32
    %c0_i32_0 = arith.constant 0 : i32
    %c0_i32_1 = arith.constant 0 : i32
    return %c0_i32, %c0_i32_0 : i32, i32
  }
  func.func @transform_4(%arg0: i32) -> (i32, i32) {
    %c0_i32 = arith.constant 0 : i32
    %c0_i32_0 = arith.constant 0 : i32
    %c0_i32_1 = arith.constant 0 : i32
    return %c0_i32, %c0_i32_0 : i32, i32
  }
  func.func @transform_5(%arg0: i32) -> (i32, i32) {
    %c0_i32 = arith.constant 0 : i32
    %c0_i32_0 = arith.constant 0 : i32
    %c0_i32_1 = arith.constant 0 : i32
    return %c0_i32, %c0_i32_0 : i32, i32
  }
  func.func @transform_6(%arg0: i32) -> (i32, i32) {
    %c0_i32 = arith.constant 0 : i32
    %c0_i32_0 = arith.constant 0 : i32
    %c0_i32_1 = arith.constant 0 : i32
    return %c0_i32, %c0_i32_0 : i32, i32
  }
  func.func @transform_7(%arg0: i32) -> (i32, i32) {
    %c0_i32 = arith.constant 0 : i32
    %c0_i32_0 = arith.constant 0 : i32
    return %arg0, %c0_i32 : i32, i32
  }
}

</mosaic_0001>

<bundles_post_ra>
// kernel: tpu_custom_call.1
= control target key start
LH: loop header
LB: loop body
LE: loop exit
PB: predicated region body
PF: predicated region fallthrough
CT: control target
= control target key end

     0   :  { %v1122_v3 = vmov 0.0|0.0   ;;  %v1123_v6 = vmov 0.0   ;;  %vm96_vm0 = vcmask 793600   ;;  %s1625_s0 = inlined_call_operand.vmem [shape: f32[128,225], index: 0, kind: input, shape index: {}]   ;;  %s1626_s1 = inlined_call_operand.vmem [shape: f32[225,24], index: 1, kind: input, shape index: {}]   ;;  %s1627_s2 = inlined_call_operand.vmem [shape: f32[1,24], index: 2, kind: input, shape index: {}]   ;;  %s1628_s3 = inlined_call_operand.vmem [shape: f32[24,225], index: 3, kind: input, shape index: {}]   ;;  %s1629_s4 = inlined_call_operand.vmem [shape: f32[1,225], index: 4, kind: input, shape index: {}]   ;;  %s1630_s5 = inlined_call_operand.vmem [shape: f32[1,225], index: 5, kind: input, shape index: {}]   ;;  %s1631_s6 = inlined_call_operand.<no memory space> [shape: f32[1,1], index: 6, kind: input, shape index: {}]   ;;  %s1632_s7 = inlined_call_operand.hbm [shape: f32[1,128], index: 7, kind: output, shape index: {}]  }
   0x1   :  { %v60_v0 = vld [vmem:[%s1626_s1] sm:$0xff]  ;;  %v61_v1 = vld [vmem:[%s1626_s1 + $0x8] sm:$0xff]  ;;  %v62_v2 = vld [vmem:[%s1626_s1 + $0x10] sm:$0xff]  ;;  %985 = vmatprep.subr.bf16.mxu0 %v1122_v3  ;;  %441 = vmatprep.mubr.f32.mxu1 %v1123_v6 }
   0x2   :  { %v986_v4 = vpack.c.bf16 %v61_v1, %v60_v0  ;;  %v63_v5 = vld [vmem:[%s1626_s1 + $0x18] sm:$0xff]  ;;  %v64_v8 = vld [vmem:[%s1626_s1 + $0x20] sm:$0xff]  ;;  %v65_v9 = vld [vmem:[%s1626_s1 + $0x28] sm:$0xff] }
   0x3   :  { %v989_v7 = vpack.c.bf16 %v63_v5, %v62_v2  ;;  %v992_v10 = vpack.c.bf16 %v65_v9, %v64_v8  ;;  %v66_v11 = vld [vmem:[%s1626_s1 + $0x30] sm:$0xff]  ;;  %v67_v12 = vld [vmem:[%s1626_s1 + $0x38] sm:$0xff]  ;;  %v29_v13 = vld [vmem:[%s1625_s0 + $0x8] sm:$0xff] }
   0x4   :  { %987 = vmatpush1.bf16.msra.mxu0 %v986_v4  ;;  %937 = vmatprep.mubr.msk.f32.mxu0 %vm96_vm0, %v29_v13  ;;  %v995_v14 = vpack.c.bf16 %v67_v12, %v66_v11  ;;  %v68_v15 = vld [vmem:[%s1626_s1 + $0x40] sm:$0xff]  ;;  %v69_v16 = vld [vmem:[%s1626_s1 + $0x48] sm:$0xff]  ;;  %v70_v18 = vld [vmem:[%s1626_s1 + $0x50] sm:$0xff] }
   0x5   :  { %988 = vmatprep.subr.bf16.mxu0 %v1122_v3  ;;  %v998_v17 = vpack.c.bf16 %v69_v16, %v68_v15  ;;  %v71_v19 = vld [vmem:[%s1626_s1 + $0x58] sm:$0xff]  ;;  %v72_v21 = vld [vmem:[%s1626_s1 + $0x60] sm:$0xff]  ;;  %v73_v22 = vld [vmem:[%s1626_s1 + $0x68] sm:$0xff] }
   0x6   :  { %v1001_v20 = vpack.c.bf16 %v71_v19, %v70_v18  ;;  %v311_v23 = vld [vmem:[%s1628_s3 + $0x8] sm:$0xff]  ;;  %v313_v24 = vld [vmem:[%s1628_s3 + $0x18] sm:$0xff] }
   0x7   :  { %v1027_v25 = vpack.c.bf16 %v313_v24, %v311_v23 }
   0x8   :  { %990 = vmatpush1.bf16.msra.mxu0 %v989_v7 }
   0x9   :  { %991 = vmatprep.subr.bf16.mxu0 %v1122_v3 }
   0xc   :  { %993 = vmatpush1.bf16.msra.mxu0 %v992_v10 }
   0xd   :  { %994 = vmatprep.subr.bf16.mxu0 %v1122_v3 }
  0x10   :  { %996 = vmatpush1.bf16.msra.mxu0 %v995_v14 }
  0x11   :  { %997 = vmatprep.subr.bf16.mxu0 %v1122_v3 }
  0x14   :  { %999 = vmatpush1.bf16.msra.mxu0 %v998_v17 }
  0x15   :  { %1000 = vmatprep.subr.bf16.mxu0 %v1122_v3 }
  0x16   :  { %13 = vsyncpa [#allocation4], 0  ;;  %v1004_v26 = vpack.c.bf16 %v73_v22, %v72_v21  ;;  %1028 = vmatprep.subr.bf16.mxu1 %v1027_v25  ;;  %v74_v27 = vld [vmem:[%s1626_s1 + $0x70] sm:$0xff]  ;;  %v75_v28 = vld [vmem:[%s1626_s1 + $0x78] sm:$0xff]  ;;  %vm145_vm1 = vcmask 1040384   ;;  %vm328_vm2 = vcmask 195584  }
  0x17   :  { %v1007_v29 = vpack.c.bf16 %v75_v28, %v74_v27  ;;  %v76_v30 = vld [vmem:[%s1626_s1 + $0x80] sm:$0xff]  ;;  %v77_v31 = vld [vmem:[%s1626_s1 + $0x88] sm:$0xff]  ;;  %v78_v33 = vld [vmem:[%s1626_s1 + $0x90] sm:$0xff]  ;;  %vm819_vm3 = vcmask 130112   ;;  %vm826_vm4 = vcmask 195712   ;;  %vm833_vm5 = vcmask 261312  }
  0x18   :  { %1002 = vmatpush1.bf16.msra.mxu0 %v1001_v20  ;;  %v1010_v32 = vpack.c.bf16 %v77_v31, %v76_v30  ;;  %v79_v34 = vld [vmem:[%s1626_s1 + $0x98] sm:$0xff]  ;;  %v80_v36 = vld [vmem:[%s1626_s1 + $0xa0] sm:$0xff]  ;;  %v81_v37 = vld [vmem:[%s1626_s1 + $0xa8] sm:$0xff]  ;;  %vm840_vm6 = vcmask 326912   ;;  %vm847_vm7 = vcmask 392512   ;;  %vm854_vm8 = vcmask 458112  }
  0x19   :  { %1003 = vmatprep.subr.bf16.mxu0 %v1122_v3  ;;  %v1013_v35 = vpack.c.bf16 %v79_v34, %v78_v33  ;;  %v1016_v38 = vpack.c.bf16 %v81_v37, %v80_v36  ;;  %v82_v39 = vld [vmem:[%s1626_s1 + $0xb0] sm:$0xff]  ;;  %v83_v40 = vld [vmem:[%s1626_s1 + $0xb8] sm:$0xff]  ;;  %v84_v42 = vld [vmem:[%s1626_s1 + $0xc0] sm:$0xff]  ;;  %vm861_vm9 = vcmask 523712   ;;  %vm868_vm10 = vcmask 589312  }
  0x1a   :  { %v1019_v41 = vpack.c.bf16 %v83_v40, %v82_v39  ;;  %v85_v43 = vld [vmem:[%s1626_s1 + $0xc8] sm:$0xff]  ;;  %v86_v45 = vld [vmem:[%s1626_s1 + $0xd0] sm:$0xff]  ;;  %v87_v46 = vld [vmem:[%s1626_s1 + $0xd8] sm:$0xff]  ;;  %vm875_vm11 = vcmask 654912   ;;  %vm882_vm12 = vcmask 720512   ;;  %vm889_vm13 = vcmask 786112  }
  0x1b   :  { %v1022_v44 = vpack.c.bf16 %v85_v43, %v84_v42  ;;  %v1025_v47 = vpack.c.bf16 %v87_v46, %v86_v45  ;;  %v88_v48 = vld [vmem:[%s1626_s1 + $0xe0] sm:$0x1]  ;;  %v31_v50 = vld [vmem:[%s1625_s0 + $0x18] sm:$0xff]  ;;  %v30_v51 = vld [vmem:[%s1625_s0 + $0x10] sm:$0xff]  ;;  %vm896_vm14 = vcmask 851712   ;;  %vm903_vm15 = vcmask 917312  }
  0x1c   :  { %1005 = vmatpush1.bf16.msra.mxu0 %v1004_v26  ;;  %v28_v49 = vld [vmem:[%s1625_s0] sm:$0xff]  ;;  %v33_v52 = vld [vmem:[%s1625_s0 + $0x28] sm:$0xff]  ;;  %v35_v54 = vld [vmem:[%s1625_s0 + $0x38] sm:$0xff] }
  0x1d   :  { %1006 = vmatprep.subr.bf16.mxu0 %v1122_v3  ;;  %v32_v53 = vld [vmem:[%s1625_s0 + $0x20] sm:$0xff]  ;;  %v34_v55 = vld [vmem:[%s1625_s0 + $0x30] sm:$0xff]  ;;  %v37_v56 = vld [vmem:[%s1625_s0 + $0x48] sm:$0xff] }
  0x1e   :  { %v36_v57 = vld [vmem:[%s1625_s0 + $0x40] sm:$0xff]  ;;  %v39_v58 = vld [vmem:[%s1625_s0 + $0x58] sm:$0xff]  ;;  %v38_v59 = vld [vmem:[%s1625_s0 + $0x50] sm:$0xff] }
  0x1f   :  { %v41_v60 = vld [vmem:[%s1625_s0 + $0x68] sm:$0xff]  ;;  %v40_v61 = vld [vmem:[%s1625_s0 + $0x60] sm:$0xff]  ;;  %v43_v62 = vld [vmem:[%s1625_s0 + $0x78] sm:$0xff] }
  0x20   :  { %1008 = vmatpush1.bf16.msra.mxu0 %v1007_v29  ;;  %v42_v63 = vld [vmem:[%s1625_s0 + $0x70] sm:$0xff]  ;;  %v45_v0 = vld [vmem:[%s1625_s0 + $0x88] sm:$0xff]  ;;  %v44_v1 = vld [vmem:[%s1625_s0 + $0x80] sm:$0xff] }
  0x21   :  { %1009 = vmatprep.subr.bf16.mxu0 %v1122_v3  ;;  %v47_v2 = vld [vmem:[%s1625_s0 + $0x98] sm:$0xff]  ;;  %v49_v4 = vld [vmem:[%s1625_s0 + $0xa8] sm:$0xff]  ;;  %v48_v5 = vld [vmem:[%s1625_s0 + $0xa0] sm:$0xff] }
  0x22   :  { %v51_v7 = vld [vmem:[%s1625_s0 + $0xb8] sm:$0xff]  ;;  %v50_v8 = vld [vmem:[%s1625_s0 + $0xb0] sm:$0xff]  ;;  %v53_v9 = vld [vmem:[%s1625_s0 + $0xc8] sm:$0xff] }
  0x23   :  { %v52_v10 = vld [vmem:[%s1625_s0 + $0xc0] sm:$0xff]  ;;  %v55_v11 = vld [vmem:[%s1625_s0 + $0xd8] sm:$0xff]  ;;  %v54_v12 = vld [vmem:[%s1625_s0 + $0xd0] sm:$0xff] }
  0x24   :  { %1011 = vmatpush1.bf16.msra.mxu0 %v1010_v32  ;;  %v57_v13 = vld [vmem:[%s1625_s0 + $0xe8] sm:$0xff]  ;;  %v56_v14 = vld [vmem:[%s1625_s0 + $0xe0] sm:$0xff]  ;;  %v59_v15 = vld [vmem:[%s1625_s0 + $0xf8] sm:$0xff] }
  0x25   :  { %1012 = vmatprep.subr.bf16.mxu0 %v1122_v3  ;;  %v58_v16 = vld [vmem:[%s1625_s0 + $0xf0] sm:$0xff]  ;;  %v310_v17 = vld [vmem:[%s1628_s3] sm:$0xff]  ;;  %v315_v20 = vld [vmem:[%s1628_s3 + $0x28] sm:$0xff] }
  0x26   :  { %v312_v18 = vld [vmem:[%s1628_s3 + $0x10] sm:$0xff]  ;;  %v314_v21 = vld [vmem:[%s1628_s3 + $0x20] sm:$0xff] }
  0x27   :  { %v1029_v19 = vpack.c.bf16 %v312_v18, %v310_v17  ;;  %v1401_v22 = vld [vmem:[%s1627_s2] ss:$0 sm:$0xff] }
  0x28   :  { %1014 = vmatpush1.bf16.msra.mxu0 %v1013_v35 }
  0x29   :  { %1015 = vmatprep.subr.bf16.mxu0 %v1122_v3  ;;  %1030 = vmatpush1.bf16.msra.mxu1 %v1029_v19 }
  0x2a   :  { %381 = vmatprep.subr.mxu1 %v315_v20 }
  0x2c   :  { %1017 = vmatpush1.bf16.msra.mxu0 %v1016_v38 }
  0x2d   :  { %1018 = vmatprep.subr.bf16.mxu0 %v1122_v3  ;;  %382 = vmatpush1.msra.mxu1 %v314_v21 }
  0x30   :  { %1020 = vmatpush1.bf16.msra.mxu0 %v1019_v41 }
  0x31   :  { %1021 = vmatprep.subr.bf16.mxu0 %v1122_v3 }
  0x34   :  { %1023 = vmatpush1.bf16.msra.mxu0 %v1022_v44 }
  0x35   :  { %1024 = vmatprep.subr.bf16.mxu0 %v1122_v3  ;;  %v46_v3 = vld [vmem:[%s1625_s0 + $0x90] sm:$0xff] }
  0x38   :  { %1026 = vmatpush1.bf16.msra.mxu0 %v1025_v47 }
  0x39   :  { %205 = vmatprep.subr.mxu0 %v1123_v6 }
  0x3c   :  { %936 = vmatpush1.msk.msra.mxu0 %vm145_vm1, %v88_v48  ;;  %vm917_vm1 = vcmask 1048512  }
  0x3d   :  { %214 = vmatmul.mubr.f32.vlgmr.msra.gmra.mrb[0].mxu0 %v28_v49 }
  0x3e   :  { %938 = vmatprep.mubr.msk.f32.mxu0 %vm96_vm0, %v31_v50 }
  0x41   :  { %219 = vmatmul.mubr.f32.gmra.mrb[2].mxu0 %v30_v51 }
  0x42   :  { %939 = vmatprep.mubr.msk.f32.mxu0 %vm96_vm0, %v33_v52 }
  0x45   :  { %224 = vmatmul.mubr.f32.gmra.mrb[4].mxu0 %v32_v53 }
  0x46   :  { %940 = vmatprep.mubr.msk.f32.mxu0 %vm96_vm0, %v35_v54 }
  0x49   :  { %229 = vmatmul.mubr.f32.gmra.mrb[6].mxu0 %v34_v55 }
  0x4a   :  { %941 = vmatprep.mubr.msk.f32.mxu0 %vm96_vm0, %v37_v56 }
  0x4d   :  { %234 = vmatmul.mubr.f32.gmra.mrb[8].mxu0 %v36_v57 }
  0x4e   :  { %942 = vmatprep.mubr.msk.f32.mxu0 %vm96_vm0, %v39_v58 }
  0x51   :  { %239 = vmatmul.mubr.f32.gmra.mrb[10].mxu0 %v38_v59 }
  0x52   :  { %943 = vmatprep.mubr.msk.f32.mxu0 %vm96_vm0, %v41_v60 }
  0x55   :  { %244 = vmatmul.mubr.f32.gmra.mrb[12].mxu0 %v40_v61 }
  0x56   :  { %944 = vmatprep.mubr.msk.f32.mxu0 %vm96_vm0, %v43_v62 }
  0x59   :  { %249 = vmatmul.mubr.f32.gmra.mrb[14].mxu0 %v42_v63 }
  0x5a   :  { %945 = vmatprep.mubr.msk.f32.mxu0 %vm96_vm0, %v45_v0 }
  0x5d   :  { %254 = vmatmul.mubr.f32.gmra.mrb[16].mxu0 %v44_v1 }
  0x5e   :  { %946 = vmatprep.mubr.msk.f32.mxu0 %vm96_vm0, %v47_v2 }
  0x61   :  { %259 = vmatmul.mubr.f32.gmra.mrb[18].mxu0 %v46_v3 }
  0x62   :  { %947 = vmatprep.mubr.msk.f32.mxu0 %vm96_vm0, %v49_v4 }
  0x65   :  { %264 = vmatmul.mubr.f32.gmra.mrb[20].mxu0 %v48_v5 }
  0x66   :  { %948 = vmatprep.mubr.msk.f32.mxu0 %vm96_vm0, %v51_v7 }
  0x69   :  { %269 = vmatmul.mubr.f32.gmra.mrb[22].mxu0 %v50_v8 }
  0x6a   :  { %949 = vmatprep.mubr.msk.f32.mxu0 %vm96_vm0, %v53_v9 }
  0x6d   :  { %274 = vmatmul.mubr.f32.gmra.mrb[24].mxu0 %v52_v10 }
  0x6e   :  { %950 = vmatprep.mubr.msk.f32.mxu0 %vm96_vm0, %v55_v11 }
  0x71   :  { %279 = vmatmul.mubr.f32.gmra.mrb[26].mxu0 %v54_v12 }
  0x72   :  { %951 = vmatprep.mubr.msk.f32.mxu0 %vm96_vm0, %v57_v13 }
  0x75   :  { %284 = vmatmul.mubr.f32.gmra.mrb[28].mxu0 %v56_v14 }
  0x76   :  { %952 = vmatprep.mubr.msk.f32.mxu0 %vm96_vm0, %v59_v15 }
  0x79   :  { %289 = vmatmul.mubr.f32.gmra.mrb[30].mxu0 %v58_v16 }
 0x110   :  { %v215_v23 = vpop.f32.mrb[0].mxu0 }
 0x111   :  { %v216_v24 = vadd.f32 %v1401_v22, %v215_v23  ;;  %v217_v25 = vpop.f32.mrb[1].mxu0 }
 0x112   :  { %v318_v25 = vlaneseq }
 0x113   :  { %v294_v26 = vmax.f32 %v216_v24, 0.0 }
 0x114   :  { %v220_v27 = vpop.f32.mrb[2].mxu0 }
 0x115   :  { %v221_v28 = vadd.f32 %v1401_v22, %v220_v27  ;;  %v222_v29 = vpop.f32.mrb[3].mxu0  ;;  %953 = vmatmul.mubr.msk.f32.vlgmr.msra.gmra.mrb[0].mxu1 %vm328_vm2, %v294_v26  ;;  %v1451_v26 = vshrl.u32 %v318_v25, 7 }
 0x116   :  { %447 = vmatprep.mubr.f32.mxu1 %v1123_v6 }
 0x117   :  { %v295_v30 = vmax.f32 %v221_v28, 0.0  ;;  %v320_v27 = vsub.s32 0, %v1451_v26  ;;  %v316_v28 = vld [vmem:[%s1629_s4] sm:$0x3] }
 0x118   :  { %v225_v31 = vpop.f32.mrb[4].mxu0 }
 0x119   :  { %v226_v32 = vadd.f32 %v1401_v22, %v225_v31  ;;  %v227_v33 = vpop.f32.mrb[5].mxu0  ;;  %954 = vmatmul.mubr.msk.f32.gmra.mrb[2].mxu1 %vm328_vm2, %v295_v30  ;;  %v1458_v29 = vrot.slane %v316_v28, %v320_v27 }
 0x11a   :  { %453 = vmatprep.mubr.f32.mxu1 %v1123_v6 }
 0x11b   :  { %v296_v34 = vmax.f32 %v226_v32, 0.0 }
 0x11c   :  { %v230_v35 = vpop.f32.mrb[6].mxu0 }
 0x11d   :  { %v231_v36 = vadd.f32 %v1401_v22, %v230_v35  ;;  %v232_v37 = vpop.f32.mrb[7].mxu0  ;;  %955 = vmatmul.mubr.msk.f32.gmra.mrb[4].mxu1 %vm328_vm2, %v296_v34 }
 0x11e   :  { %459 = vmatprep.mubr.f32.mxu1 %v1123_v6 }
 0x11f   :  { %v297_v38 = vmax.f32 %v231_v36, 0.0 }
 0x120   :  { %v235_v39 = vpop.f32.mrb[8].mxu0 }
 0x121   :  { %v236_v40 = vadd.f32 %v1401_v22, %v235_v39  ;;  %v237_v41 = vpop.f32.mrb[9].mxu0  ;;  %956 = vmatmul.mubr.msk.f32.gmra.mrb[6].mxu1 %vm328_vm2, %v297_v38 }
 0x122   :  { %465 = vmatprep.mubr.f32.mxu1 %v1123_v6 }
 0x123   :  { %v298_v42 = vmax.f32 %v236_v40, 0.0 }
 0x124   :  { %v240_v43 = vpop.f32.mrb[10].mxu0 }
 0x125   :  { %v241_v44 = vadd.f32 %v1401_v22, %v240_v43  ;;  %v242_v45 = vpop.f32.mrb[11].mxu0  ;;  %957 = vmatmul.mubr.msk.f32.gmra.mrb[8].mxu1 %vm328_vm2, %v298_v42 }
 0x126   :  { %471 = vmatprep.mubr.f32.mxu1 %v1123_v6 }
 0x127   :  { %v299_v46 = vmax.f32 %v241_v44, 0.0 }
 0x128   :  { %v245_v47 = vpop.f32.mrb[12].mxu0 }
 0x129   :  { %v246_v48 = vadd.f32 %v1401_v22, %v245_v47  ;;  %v247_v49 = vpop.f32.mrb[13].mxu0  ;;  %958 = vmatmul.mubr.msk.f32.gmra.mrb[10].mxu1 %vm328_vm2, %v299_v46 }
 0x12a   :  { %477 = vmatprep.mubr.f32.mxu1 %v1123_v6 }
 0x12b   :  { %v300_v50 = vmax.f32 %v246_v48, 0.0 }
 0x12c   :  { %v250_v51 = vpop.f32.mrb[14].mxu0 }
 0x12d   :  { %v251_v52 = vadd.f32 %v1401_v22, %v250_v51  ;;  %v252_v53 = vpop.f32.mrb[15].mxu0  ;;  %959 = vmatmul.mubr.msk.f32.gmra.mrb[12].mxu1 %vm328_vm2, %v300_v50 }
 0x12e   :  { %483 = vmatprep.mubr.f32.mxu1 %v1123_v6 }
 0x12f   :  { %v301_v54 = vmax.f32 %v251_v52, 0.0 }
 0x130   :  { %v255_v55 = vpop.f32.mrb[16].mxu0 }
 0x131   :  { %v256_v56 = vadd.f32 %v1401_v22, %v255_v55  ;;  %v257_v57 = vpop.f32.mrb[17].mxu0  ;;  %960 = vmatmul.mubr.msk.f32.gmra.mrb[14].mxu1 %vm328_vm2, %v301_v54 }
 0x132   :  { %489 = vmatprep.mubr.f32.mxu1 %v1123_v6 }
 0x133   :  { %v302_v58 = vmax.f32 %v256_v56, 0.0 }
 0x134   :  { %v260_v59 = vpop.f32.mrb[18].mxu0 }
 0x135   :  { %v261_v60 = vadd.f32 %v1401_v22, %v260_v59  ;;  %v262_v61 = vpop.f32.mrb[19].mxu0  ;;  %961 = vmatmul.mubr.msk.f32.gmra.mrb[16].mxu1 %vm328_vm2, %v302_v58 }
 0x136   :  { %495 = vmatprep.mubr.f32.mxu1 %v1123_v6 }
 0x137   :  { %v303_v62 = vmax.f32 %v261_v60, 0.0 }
 0x138   :  { %v265_v63 = vpop.f32.mrb[20].mxu0 }
 0x139   :  { %v266_v0 = vadd.f32 %v1401_v22, %v265_v63  ;;  %v267_v1 = vpop.f32.mrb[21].mxu0  ;;  %962 = vmatmul.mubr.msk.f32.gmra.mrb[18].mxu1 %vm328_vm2, %v303_v62 }
 0x13a   :  { %501 = vmatprep.mubr.f32.mxu1 %v1123_v6 }
 0x13b   :  { %v304_v2 = vmax.f32 %v266_v0, 0.0 }
 0x13c   :  { %v270_v3 = vpop.f32.mrb[22].mxu0 }
 0x13d   :  { %v271_v4 = vadd.f32 %v1401_v22, %v270_v3  ;;  %v272_v5 = vpop.f32.mrb[23].mxu0  ;;  %963 = vmatmul.mubr.msk.f32.gmra.mrb[20].mxu1 %vm328_vm2, %v304_v2 }
 0x13e   :  { %507 = vmatprep.mubr.f32.mxu1 %v1123_v6 }
 0x13f   :  { %v305_v7 = vmax.f32 %v271_v4, 0.0 }
 0x140   :  { %v275_v8 = vpop.f32.mrb[24].mxu0 }
 0x141   :  { %v276_v9 = vadd.f32 %v1401_v22, %v275_v8  ;;  %v277_v10 = vpop.f32.mrb[25].mxu0  ;;  %964 = vmatmul.mubr.msk.f32.gmra.mrb[22].mxu1 %vm328_vm2, %v305_v7 }
 0x142   :  { %513 = vmatprep.mubr.f32.mxu1 %v1123_v6 }
 0x143   :  { %v306_v11 = vmax.f32 %v276_v9, 0.0 }
 0x144   :  { %v280_v12 = vpop.f32.mrb[26].mxu0 }
 0x145   :  { %v281_v13 = vadd.f32 %v1401_v22, %v280_v12  ;;  %v282_v14 = vpop.f32.mrb[27].mxu0  ;;  %965 = vmatmul.mubr.msk.f32.gmra.mrb[24].mxu1 %vm328_vm2, %v306_v11 }
 0x146   :  { %519 = vmatprep.mubr.f32.mxu1 %v1123_v6 }
 0x147   :  { %v307_v15 = vmax.f32 %v281_v13, 0.0 }
 0x148   :  { %v285_v16 = vpop.f32.mrb[28].mxu0 }
 0x149   :  { %v286_v17 = vadd.f32 %v1401_v22, %v285_v16  ;;  %v287_v18 = vpop.f32.mrb[29].mxu0  ;;  %966 = vmatmul.mubr.msk.f32.gmra.mrb[26].mxu1 %vm328_vm2, %v307_v15 }
 0x14a   :  { %525 = vmatprep.mubr.f32.mxu1 %v1123_v6 }
 0x14b   :  { %v308_v19 = vmax.f32 %v286_v17, 0.0 }
 0x14c   :  { %v290_v20 = vpop.f32.mrb[30].mxu0 }
 0x14d   :  { %v291_v21 = vadd.f32 %v1401_v22, %v290_v20  ;;  %v292_v23 = vpop.f32.mrb[31].mxu0  ;;  %967 = vmatmul.mubr.msk.f32.gmra.mrb[28].mxu1 %vm328_vm2, %v308_v19  ;;  %v324_v22 = vsub.s32 1, %v1451_v26 }
 0x14e   :  { %531 = vmatprep.mubr.f32.mxu1 %v1123_v6  ;;  %v570_v6 = vld [vmem:[%s1630_s5] sm:$0x3] }
 0x14f   :  { %v309_v24 = vmax.f32 %v291_v21, 0.0  ;;  %v1460_v30 = vrot.slane %v316_v28, %v324_v22  ;;  %v1467_v35 = vrot.slane %v570_v6, %v324_v22  ;;  %v1469_v37 = vrot.slane %v570_v6, %v320_v27 }
 0x151   :  { %968 = vmatmul.mubr.msk.f32.gmra.mrb[30].mxu1 %vm328_vm2, %v309_v24 }
 0x1e8   :  { %v443_v31 = vpop.f32.mrb[0].mxu1 }
 0x1e9   :  { %v444_v32 = vadd.f32 %v443_v31, %v1458_v29  ;;  %v445_v33 = vpop.f32.mrb[1].mxu1 }
 0x1ea   :  { %v446_v34 = vadd.f32 %v445_v33, %v1460_v30 }
 0x1eb   :  { %v538_v36 = vmax.f32 %v444_v32, 0.0 }
 0x1ec   :  { %v539_v38 = vmax.f32 %v446_v34, 0.0  ;;  %v449_v39 = vpop.f32.mrb[2].mxu1 }
 0x1ed   :  { %v450_v40 = vadd.f32 %v449_v39, %v1458_v29  ;;  %v451_v41 = vpop.f32.mrb[3].mxu1  ;;  %v582_v45 = vmul.f32 %v1469_v37, %v538_v36 }
 0x1ee   :  { %v452_v42 = vadd.f32 %v451_v41, %v1460_v30  ;;  %v583_v43 = vmul.f32 %v1467_v35, %v539_v38 }
 0x1ef   :  { %v540_v44 = vmax.f32 %v450_v40, 0.0 }
 0x1f0   :  { %v541_v46 = vmax.f32 %v452_v42, 0.0  ;;  %v455_v47 = vpop.f32.mrb[4].mxu1  ;;  %v614_v48 = vsel %vm96_vm0, %v583_v43, 0.0 }
 0x1f1   :  { %v456_v49 = vadd.f32 %v455_v47, %v1458_v29  ;;  %v457_v50 = vpop.f32.mrb[5].mxu1  ;;  %v615_v51 = vadd.f32 %v614_v48, %v582_v45  ;;  %v584_v54 = vmul.f32 %v1469_v37, %v540_v44 }
 0x1f2   :  { %v585_v52 = vmul.f32 %v1467_v35, %v541_v46  ;;  %v458_v53 = vadd.f32 %v457_v50, %v1460_v30 }
 0x1f3   :  { %v542_v55 = vmax.f32 %v456_v49, 0.0  ;;  %616 = vadd.xlane.f32.xlu0 %v615_v51 }
 0x1f4   :  { %v543_v56 = vmax.f32 %v458_v53, 0.0  ;;  %v461_v57 = vpop.f32.mrb[6].mxu1  ;;  %v618_v58 = vsel %vm96_vm0, %v585_v52, 0.0 }
 0x1f5   :  { %v462_v59 = vadd.f32 %v461_v57, %v1458_v29  ;;  %v463_v60 = vpop.f32.mrb[7].mxu1  ;;  %v619_v61 = vadd.f32 %v618_v58, %v584_v54  ;;  %v586_v1 = vmul.f32 %v1469_v37, %v542_v55 }
 0x1f6   :  { %v464_v62 = vadd.f32 %v463_v60, %v1460_v30  ;;  %v587_v63 = vmul.f32 %v1467_v35, %v543_v56 }
 0x1f7   :  { %v544_v0 = vmax.f32 %v462_v59, 0.0  ;;  %620 = vadd.xlane.f32.xlu0 %v619_v61 }
 0x1f8   :  { %v545_v2 = vmax.f32 %v464_v62, 0.0  ;;  %v467_v3 = vpop.f32.mrb[8].mxu1  ;;  %v622_v4 = vsel %vm96_vm0, %v587_v63, 0.0 }
 0x1f9   :  { %v468_v5 = vadd.f32 %v467_v3, %v1458_v29  ;;  %v469_v7 = vpop.f32.mrb[9].mxu1  ;;  %v623_v8 = vadd.f32 %v622_v4, %v586_v1  ;;  %v588_v11 = vmul.f32 %v1469_v37, %v544_v0 }
 0x1fa   :  { %v589_v9 = vmul.f32 %v1467_v35, %v545_v2  ;;  %v470_v10 = vadd.f32 %v469_v7, %v1460_v30 }
 0x1fb   :  { %v546_v12 = vmax.f32 %v468_v5, 0.0  ;;  %624 = vadd.xlane.f32.xlu1 %v623_v8 }
 0x1fc   :  { %v547_v13 = vmax.f32 %v470_v10, 0.0  ;;  %v473_v14 = vpop.f32.mrb[10].mxu1  ;;  %v626_v15 = vsel %vm96_vm0, %v589_v9, 0.0 }
 0x1fd   :  { %v474_v16 = vadd.f32 %v473_v14, %v1458_v29  ;;  %v475_v17 = vpop.f32.mrb[11].mxu1  ;;  %v627_v18 = vadd.f32 %v626_v15, %v588_v11  ;;  %v590_v21 = vmul.f32 %v1469_v37, %v546_v12 }
 0x1fe   :  { %v591_v19 = vmul.f32 %v1467_v35, %v547_v13  ;;  %v476_v20 = vadd.f32 %v475_v17, %v1460_v30 }
 0x1ff   :  { %v548_v23 = vmax.f32 %v474_v16, 0.0  ;;  %628 = vadd.xlane.f32.xlu1 %v627_v18 }
 0x200   :  { %v549_v24 = vmax.f32 %v476_v20, 0.0  ;;  %v479_v27 = vpop.f32.mrb[12].mxu1  ;;  %v630_v28 = vsel %vm96_vm0, %v591_v19, 0.0 }
 0x201   :  { %v480_v22 = vadd.f32 %v479_v27, %v1458_v29  ;;  %v481_v6 = vpop.f32.mrb[13].mxu1  ;;  %v631_v31 = vadd.f32 %v630_v28, %v590_v21  ;;  %v592_v34 = vmul.f32 %v1469_v37, %v548_v23 }
 0x202   :  { %v593_v32 = vmul.f32 %v1467_v35, %v549_v24  ;;  %v482_v33 = vadd.f32 %v481_v6, %v1460_v30 }
 0x203   :  { %v550_v36 = vmax.f32 %v480_v22, 0.0  ;;  %632 = vadd.xlane.f32.xlu0 %v631_v31 }
 0x204   :  { %v551_v38 = vmax.f32 %v482_v33, 0.0  ;;  %v485_v39 = vpop.f32.mrb[14].mxu1  ;;  %v634_v40 = vsel %vm96_vm0, %v593_v32, 0.0 }
 0x205   :  { %v486_v41 = vadd.f32 %v485_v39, %v1458_v29  ;;  %v487_v42 = vpop.f32.mrb[15].mxu1  ;;  %v635_v43 = vadd.f32 %v634_v40, %v592_v34  ;;  %v594_v46 = vmul.f32 %v1469_v37, %v550_v36 }
 0x206   :  { %v595_v44 = vmul.f32 %v1467_v35, %v551_v38  ;;  %v488_v45 = vadd.f32 %v487_v42, %v1460_v30 }
 0x207   :  { %v552_v47 = vmax.f32 %v486_v41, 0.0  ;;  %636 = vadd.xlane.f32.xlu1 %v635_v43 }
 0x208   :  { %v553_v48 = vmax.f32 %v488_v45, 0.0  ;;  %v491_v49 = vpop.f32.mrb[16].mxu1  ;;  %v638_v50 = vsel %vm96_vm0, %v595_v44, 0.0 }
 0x209   :  { %v492_v51 = vadd.f32 %v491_v49, %v1458_v29  ;;  %v493_v52 = vpop.f32.mrb[17].mxu1  ;;  %v639_v53 = vadd.f32 %v638_v50, %v594_v46  ;;  %v596_v56 = vmul.f32 %v1469_v37, %v552_v47 }
 0x20a   :  { %v597_v54 = vmul.f32 %v1467_v35, %v553_v48  ;;  %v494_v55 = vadd.f32 %v493_v52, %v1460_v30 }
 0x20b   :  { %v554_v57 = vmax.f32 %v492_v51, 0.0  ;;  %640 = vadd.xlane.f32.xlu0 %v639_v53 }
 0x20c   :  { %v555_v58 = vmax.f32 %v494_v55, 0.0  ;;  %v497_v59 = vpop.f32.mrb[18].mxu1  ;;  %v642_v60 = vsel %vm96_vm0, %v597_v54, 0.0 }
 0x20d   :  { %v498_v61 = vadd.f32 %v497_v59, %v1458_v29  ;;  %v499_v62 = vpop.f32.mrb[19].mxu1  ;;  %v643_v63 = vadd.f32 %v642_v60, %v596_v56  ;;  %v598_v2 = vmul.f32 %v1469_v37, %v554_v57 }
 0x20e   :  { %v599_v0 = vmul.f32 %v1467_v35, %v555_v58  ;;  %v500_v1 = vadd.f32 %v499_v62, %v1460_v30 }
 0x20f   :  { %v556_v3 = vmax.f32 %v498_v61, 0.0  ;;  %644 = vadd.xlane.f32.xlu1 %v643_v63 }
 0x210   :  { %v557_v4 = vmax.f32 %v500_v1, 0.0  ;;  %v503_v5 = vpop.f32.mrb[20].mxu1  ;;  %v646_v7 = vsel %vm96_vm0, %v599_v0, 0.0 }
 0x211   :  { %v504_v8 = vadd.f32 %v503_v5, %v1458_v29  ;;  %v505_v9 = vpop.f32.mrb[21].mxu1  ;;  %v647_v10 = vadd.f32 %v646_v7, %v598_v2  ;;  %v600_v13 = vmul.f32 %v1469_v37, %v556_v3 }
 0x212   :  { %v601_v11 = vmul.f32 %v1467_v35, %v557_v4  ;;  %v506_v12 = vadd.f32 %v505_v9, %v1460_v30 }
 0x213   :  { %v558_v14 = vmax.f32 %v504_v8, 0.0  ;;  %648 = vadd.xlane.f32.xlu0 %v647_v10 }
 0x214   :  { %v559_v15 = vmax.f32 %v506_v12, 0.0  ;;  %v509_v16 = vpop.f32.mrb[22].mxu1  ;;  %v650_v17 = vsel %vm96_vm0, %v601_v11, 0.0 }
 0x215   :  { %v510_v18 = vadd.f32 %v509_v16, %v1458_v29  ;;  %v511_v19 = vpop.f32.mrb[23].mxu1  ;;  %v651_v20 = vadd.f32 %v650_v17, %v600_v13  ;;  %v602_v24 = vmul.f32 %v1469_v37, %v558_v14 }
 0x216   :  { %v603_v21 = vmul.f32 %v1467_v35, %v559_v15  ;;  %v512_v23 = vadd.f32 %v511_v19, %v1460_v30  ;;  %v1552_v15 = vstv %s1631_s6  ;;  %s1124_s6 = smov [#allocation3]  }
 0x217   :  { %v560_v27 = vmax.f32 %v510_v18, 0.0  ;;  %652 = vadd.xlane.f32.xlu1 %v651_v20  ;;  %s927_s20 = sshll.u32 %s1124_s6, 4  ;;  %s928_s20 = int_to_ptr.vmem [resolvable:$true] %s927_s20 }
 0x218   :  { %v561_v28 = vmax.f32 %v512_v23, 0.0  ;;  %v515_v22 = vpop.f32.mrb[24].mxu1  ;;  %v654_v6 = vsel %vm96_vm0, %v603_v21, 0.0  ;;  %s1098_s21 = scalar_lea.vmem %s928_s20, 16  ;;  %s1102_s22 = scalar_lea.vmem %s928_s20, 32 }
 0x219   :  { %v516_v31 = vadd.f32 %v515_v22, %v1458_v29  ;;  %v517_v32 = vpop.f32.mrb[25].mxu1  ;;  %v655_v33 = vadd.f32 %v654_v6, %v602_v24  ;;  %v604_v38 = vmul.f32 %v1469_v37, %v560_v27  ;;  %p1099_p0 = scmp.ne.s32.totalorder %s928_s20, %s1098_s21  ;;  %p1103_p1 = scmp.lt.s32.totalorder %s928_s20, %s928_s20 }
 0x21a   :  { %v605_v34 = vmul.f32 %v1467_v35, %v561_v28  ;;  %v518_v36 = vadd.f32 %v517_v32, %v1460_v30  ;;  %p1104_p2 = scmp.lt.s32.totalorder %s1102_s22, %s1098_s21 }
 0x21b   :  { %v562_v39 = vmax.f32 %v516_v31, 0.0  ;;  %656 = vadd.xlane.f32.xlu0 %v655_v33 }
 0x21c   :  { %v563_v40 = vmax.f32 %v518_v36, 0.0  ;;  %v521_v41 = vpop.f32.mrb[26].mxu1  ;;  %v658_v42 = vsel %vm96_vm0, %v605_v34, 0.0  ;;  %p1105_p3 = por %p1104_p2, %p1103_p1 }
 0x21d   :  { %v522_v43 = vadd.f32 %v521_v41, %v1458_v29  ;;  %v523_v44 = vpop.f32.mrb[27].mxu1  ;;  %v659_v45 = vadd.f32 %v658_v42, %v604_v38  ;;  %v606_v48 = vmul.f32 %v1469_v37, %v562_v39 }
 0x21e   :  { %v607_v46 = vmul.f32 %v1467_v35, %v563_v40  ;;  %v524_v47 = vadd.f32 %v523_v44, %v1460_v30  ;;  %p1106_p4 = pnand %p1105_p3, %p1099_p0 }
 0x21f   :  { %v564_v49 = vmax.f32 %v522_v43, 0.0  ;;  %660 = vadd.xlane.f32.xlu1 %v659_v45 }
 0x220   :  { %v565_v50 = vmax.f32 %v524_v47, 0.0  ;;  %v527_v51 = vpop.f32.mrb[28].mxu1  ;;  %v662_v52 = vsel %vm96_vm0, %v607_v46, 0.0 }
 0x221   :  { %v528_v53 = vadd.f32 %v527_v51, %v1458_v29  ;;  %v529_v54 = vpop.f32.mrb[29].mxu1  ;;  %v663_v55 = vadd.f32 %v662_v52, %v606_v48  ;;  %v608_v58 = vmul.f32 %v1469_v37, %v564_v49 }
 0x222   :  { %v609_v56 = vmul.f32 %v1467_v35, %v565_v50  ;;  %v530_v57 = vadd.f32 %v529_v54, %v1460_v30 }
 0x223   :  { %v566_v59 = vmax.f32 %v528_v53, 0.0  ;;  %664 = vadd.xlane.f32.xlu0 %v663_v55 }
 0x224   :  { %v567_v60 = vmax.f32 %v530_v57, 0.0  ;;  %v533_v61 = vpop.f32.mrb[30].mxu1  ;;  %v666_v62 = vsel %vm96_vm0, %v609_v56, 0.0 }
 0x225   :  { %v534_v63 = vadd.f32 %v533_v61, %v1458_v29  ;;  %v535_v0 = vpop.f32.mrb[31].mxu1  ;;  %v667_v1 = vadd.f32 %v666_v62, %v608_v58  ;;  %v610_v4 = vmul.f32 %v1469_v37, %v566_v59 }
 0x226   :  { %v611_v2 = vmul.f32 %v1467_v35, %v567_v60  ;;  %v536_v3 = vadd.f32 %v535_v0, %v1460_v30 }
 0x227   :  { %v568_v5 = vmax.f32 %v534_v63, 0.0  ;;  %668 = vadd.xlane.f32.xlu1 %v667_v1 }
 0x228   :  { %v569_v7 = vmax.f32 %v536_v3, 0.0  ;;  %v670_v8 = vsel %vm96_vm0, %v611_v2, 0.0 }
 0x229   :  { %v671_v9 = vadd.f32 %v670_v8, %v610_v4  ;;  %v612_v11 = vmul.f32 %v1469_v37, %v568_v5 }
 0x22a   :  { %v613_v10 = vmul.f32 %v1467_v35, %v569_v7 }
 0x22b   :  { %672 = vadd.xlane.f32.xlu0 %v671_v9 }
 0x22c   :  { %v674_v29 = vsel %vm96_vm0, %v613_v10, 0.0  ;;  %vm910_vm0 = vcmask 982912  }
 0x22d   :  { %v675_v12 = vadd.f32 %v674_v29, %v612_v11 }
 0x22f   :  { %676 = vadd.xlane.f32.xlu1 %v675_v12 }
 0x280   :  { %v617_v13 = vpop.xlane.xlu0 %616 }
 0x281   :  { %v680_v18 = vadd.f32 %v1552_v15, %v617_v13 }
 0x283   :  { %v969_v21 = vmul.f32 -1.442695, %v680_v18 }
 0x284   :  { %v621_v30 = vpop.xlane.xlu0 %620 }
 0x285   :  { %v681_v37 = vadd.f32 %v1552_v15, %v621_v30  ;;  %1034 = vpow2.f32 %v969_v21 }
 0x287   :  { %v970_v27 = vmul.f32 -1.442695, %v681_v37 }
 0x288   :  { %v625_v14 = vpop.xlane.xlu1 %624 }
 0x289   :  { %v682_v20 = vadd.f32 %v1552_v15, %v625_v14  ;;  %1036 = vpow2.f32 %v970_v27 }
 0x28b   :  { %v971_v6 = vmul.f32 -1.442695, %v682_v20 }
 0x28c   :  { %v629_v16 = vpop.xlane.xlu1 %628 }
 0x28d   :  { %v683_v23 = vadd.f32 %v1552_v15, %v629_v16  ;;  %1038 = vpow2.f32 %v971_v6 }
 0x28f   :  { %v972_v32 = vmul.f32 -1.442695, %v683_v23  ;;  %v1035_v52 = vpop.eup %1034 }
 0x290   :  { %v633_v17 = vpop.xlane.xlu0 %632  ;;  %v744_v58 = vadd.f32 1.0, %v1035_v52 }
 0x291   :  { %v684_v28 = vadd.f32 %v1552_v15, %v633_v17  ;;  %1040 = vpow2.f32 %v972_v32  ;;  %v1571_v17 = vand.u32 127, %v318_v25 }
 0x293   :  { %v973_v36 = vmul.f32 -1.442695, %v684_v28  ;;  %v1037_v55 = vpop.eup %1036  ;;  %v814_v21 = vadd.s32 4294967288, %v1571_v17  ;;  %v812_v25 = vsub.s32 %v1571_v17, %v1451_v26  ;;  %v828_v28 = vadd.s32 4294967272, %v1571_v17 }
 0x294   :  { %v637_v35 = vpop.xlane.xlu1 %636  ;;  %v745_v62 = vadd.f32 1.0, %v1037_v55  ;;  %v877_v55 = vadd.s32 4294967216, %v1571_v17 }
 0x295   :  { %v685_v31 = vadd.f32 %v1552_v15, %v637_v35  ;;  %1042 = vpow2.f32 %v973_v36  ;;  %v842_v36 = vadd.s32 4294967256, %v1571_v17 }
 0x297   :  { %v974_v40 = vmul.f32 -1.442695, %v685_v31  ;;  %v1039_v57 = vpop.eup %1038  ;;  %v835_v31 = vadd.s32 4294967264, %v1571_v17 }
 0x298   :  { %v641_v19 = vpop.xlane.xlu0 %640  ;;  %v746_v0 = vadd.f32 1.0, %v1039_v57 }
 0x299   :  { %v686_v33 = vadd.f32 %v1552_v15, %v641_v19  ;;  %1044 = vpow2.f32 %v974_v40 }
 0x29b   :  { %v975_v42 = vmul.f32 -1.442695, %v686_v33  ;;  %v1041_v60 = vpop.eup %1040 }
 0x29c   :  { %v645_v24 = vpop.xlane.xlu1 %644  ;;  %v747_v3 = vadd.f32 1.0, %v1041_v60 }
 0x29d   :  { %v687_v38 = vadd.f32 %v1552_v15, %v645_v24  ;;  %1046 = vpow2.f32 %v975_v42  ;;  %v821_v24 = vadd.s32 4294967280, %v1571_v17 }
 0x29f   :  { %v976_v46 = vmul.f32 -1.442695, %v687_v38  ;;  %v1043_v63 = vpop.eup %1042  ;;  %v824_v40 = vsub.s32 %v821_v24, %v1451_v26 }
 0x2a0   :  { %v649_v22 = vpop.xlane.xlu0 %648  ;;  %v748_v8 = vadd.f32 1.0, %v1043_v63  ;;  %v884_v63 = vadd.s32 4294967208, %v1571_v17 }
 0x2a1   :  { %v688_v41 = vadd.f32 %v1552_v15, %v649_v22  ;;  %1048 = vpow2.f32 %v976_v46  ;;  %v838_v46 = vsub.s32 %v835_v31, %v1451_v26 }
 0x2a3   :  { %v977_v48 = vmul.f32 -1.442695, %v688_v41  ;;  %v1045_v2 = vpop.eup %1044  ;;  %v849_v41 = vadd.s32 4294967248, %v1571_v17 }
 0x2a4   :  { %v653_v34 = vpop.xlane.xlu1 %652  ;;  %v749_v10 = vadd.f32 1.0, %v1045_v2 }
 0x2a5   :  { %v689_v43 = vadd.f32 %v1552_v15, %v653_v34  ;;  %1050 = vpow2.f32 %v977_v48  ;;  %v817_v34 = vsub.s32 %v814_v21, %v1451_v26 }
 0x2a7   :  { %v978_v49 = vmul.f32 -1.442695, %v689_v43  ;;  %v1047_v5 = vpop.eup %1046  ;;  %v831_v43 = vsub.s32 %v828_v28, %v1451_v26 }
 0x2a8   :  { %v657_v39 = vpop.xlane.xlu0 %656  ;;  %v750_v12 = vadd.f32 1.0, %v1047_v5 }
 0x2a9   :  { %v690_v44 = vadd.f32 %v1552_v15, %v657_v39  ;;  %1052 = vpow2.f32 %v978_v49  ;;  %v845_v49 = vsub.s32 %v842_v36, %v1451_v26 }
 0x2ab   :  { %v979_v50 = vmul.f32 -1.442695, %v690_v44  ;;  %v1049_v9 = vpop.eup %1048  ;;  %v856_v44 = vadd.s32 4294967240, %v1571_v17 }
 0x2ac   :  { %v661_v45 = vpop.xlane.xlu1 %660  ;;  %v751_v18 = vadd.f32 1.0, %v1049_v9  ;;  %v880_v9 = vsub.s32 %v877_v55, %v1451_v26 }
 0x2ad   :  { %v691_v47 = vadd.f32 %v1552_v15, %v661_v45  ;;  %1054 = vpow2.f32 %v979_v50  ;;  %v870_v50 = vadd.s32 4294967224, %v1571_v17 }
 0x2af   :  { %v980_v53 = vmul.f32 -1.442695, %v691_v47  ;;  %v1051_v29 = vpop.eup %1050  ;;  %v863_v47 = vadd.s32 4294967232, %v1571_v17  ;;  %v873_v2 = vsub.s32 %v870_v50, %v1451_v26 }
 0x2b0   :  { %v665_v51 = vpop.xlane.xlu0 %664  ;;  %v752_v37 = vadd.f32 1.0, %v1051_v29 }
 0x2b1   :  { %v692_v54 = vadd.f32 %v1552_v15, %v665_v51  ;;  %1056 = vpow2.f32 %v980_v53 }
 0x2b3   :  { %v981_v56 = vmul.f32 -1.442695, %v692_v54  ;;  %v1053_v14 = vpop.eup %1052  ;;  %v852_v54 = vsub.s32 %v849_v41, %v1451_v26 }
 0x2b4   :  { %v669_v59 = vpop.xlane.xlu1 %668  ;;  %v753_v23 = vadd.f32 1.0, %v1053_v14 }
 0x2b5   :  { %v693_v61 = vadd.f32 %v1552_v15, %v669_v59  ;;  %1058 = vpow2.f32 %v981_v56 }
 0x2b6   :  { %1060 = vrcp.f32 %v744_v58  ;;  %v859_v58 = vsub.s32 %v856_v44, %v1451_v26 }
 0x2b7   :  { %v982_v1 = vmul.f32 -1.442695, %v693_v61  ;;  %v1055_v16 = vpop.eup %1054 }
 0x2b8   :  { %v673_v4 = vpop.xlane.xlu0 %672  ;;  %v754_v27 = vadd.f32 1.0, %v1055_v16 }
 0x2b9   :  { %1062 = vpow2.f32 %v982_v1  ;;  %v694_v7 = vadd.f32 %v1552_v15, %v673_v4  ;;  %v891_v4 = vadd.s32 4294967200, %v1571_v17 }
 0x2ba   :  { %1064 = vrcp.f32 %v745_v62  ;;  %v866_v62 = vsub.s32 %v863_v47, %v1451_v26 }
 0x2bb   :  { %1066 = vrcp.f32 %v746_v0  ;;  %v983_v11 = vmul.f32 -1.442695, %v694_v7  ;;  %v1057_v35 = vpop.eup %1056 }
 0x2bc   :  { %1068 = vrcp.f32 %v747_v3  ;;  %v677_v13 = vpop.xlane.xlu1 %676  ;;  %v755_v22 = vadd.f32 1.0, %v1057_v35 }
 0x2bd   :  { %1070 = vpow2.f32 %v983_v11  ;;  %v695_v30 = vadd.f32 %v1552_v15, %v677_v13  ;;  %v905_v13 = vadd.s32 4294967184, %v1571_v17 }
 0x2be   :  { %1072 = vrcp.f32 %v748_v8 }
 0x2bf   :  { %1074 = vrcp.f32 %v749_v10  ;;  %v984_v19 = vmul.f32 -1.442695, %v695_v30  ;;  %v1059_v20 = vpop.eup %1058  ;;  %v898_v10 = vadd.s32 4294967192, %v1571_v17 }
 0x2c0   :  { %1076 = vrcp.f32 %v750_v12  ;;  %v1061_v15 = vpop.eup %1060  ;;  %v756_v32 = vadd.f32 1.0, %v1059_v20  ;;  %v894_v20 = vsub.s32 %v891_v4, %v1451_v26 }
 0x2c1   :  { %1078 = vpow2.f32 %v984_v19  ;;  %v813_v60 = vrot.slane %v1061_v15, %v812_v25  ;;  %v912_v15 = vadd.s32 4294967176, %v1571_v17 }
 0x2c2   :  { %1080 = vrcp.f32 %v751_v18  ;;  %v887_v18 = vsub.s32 %v884_v63, %v1451_v26 }
 0x2c3   :  { %v1063_v6 = vpop.eup %1062  ;;  %1082 = vrcp.f32 %v752_v37  ;;  %v915_v17 = vsub.s32 %v912_v15, %v1451_v26 }
 0x2c4   :  { %v1065_v33 = vpop.eup %1064  ;;  %1084 = vrcp.f32 %v753_v23  ;;  %v757_v38 = vadd.f32 1.0, %v1063_v6  ;;  %v908_v6 = vsub.s32 %v905_v13, %v1451_v26 }
 0x2c5   :  { %v1067_v39 = vpop.eup %1066  ;;  %1086 = vrcp.f32 %v754_v27  ;;  %v818_v53 = vrot.slane %v1065_v33, %v817_v34  ;;  %v901_v27 = vsub.s32 %v898_v10, %v1451_v26 }
 0x2c6   :  { %v1069_v42 = vpop.eup %1068  ;;  %1088 = vrcp.f32 %v755_v22  ;;  %v825_v57 = vrot.slane %v1067_v39, %v824_v40 }
 0x2c7   :  { %v1071_v45 = vpop.eup %1070  ;;  %1090 = vrcp.f32 %v756_v32  ;;  %v832_v61 = vrot.slane %v1069_v42, %v831_v43  ;;  %v820_v7 = vsel %vm819_vm3, %v818_v53, %v813_v60 }
 0x2c8   :  { %v1073_v48 = vpop.eup %1072  ;;  %1092 = vrcp.f32 %v757_v38  ;;  %v758_v51 = vadd.f32 1.0, %v1071_v45  ;;  %v827_v29 = vsel %vm826_vm4, %v825_v57, %v820_v7 }
 0x2c9   :  { %v1075_v52 = vpop.eup %1074  ;;  %v839_v1 = vrot.slane %v1073_v48, %v838_v46  ;;  %v834_v30 = vsel %vm833_vm5, %v832_v61, %v827_v29 }
 0x2ca   :  { %v1077_v56 = vpop.eup %1076  ;;  %1094 = vrcp.f32 %v758_v51  ;;  %v846_v8 = vrot.slane %v1075_v52, %v845_v49 }
 0x2cb   :  { %v1079_v59 = vpop.eup %1078  ;;  %v853_v12 = vrot.slane %v1077_v56, %v852_v54  ;;  %v841_v37 = vsel %vm840_vm6, %v839_v1, %v834_v30 }
 0x2cc   :  { %v1081_v0 = vpop.eup %1080  ;;  %v759_v3 = vadd.f32 1.0, %v1079_v59  ;;  %v848_v23 = vsel %vm847_vm7, %v846_v8, %v841_v37 }
 0x2cd   :  { %v1083_v5 = vpop.eup %1082  ;;  %v860_v16 = vrot.slane %v1081_v0, %v859_v58  ;;  %v855_v28 = vsel %vm854_vm8, %v853_v12, %v848_v23 }
 0x2ce   :  { %v1085_v11 = vpop.eup %1084  ;;  %1096 = vrcp.f32 %v759_v3  ;;  %v867_v19 = vrot.slane %v1083_v5, %v866_v62 }
 0x2cf   :  { %v1087_v14 = vpop.eup %1086  ;;  %v874_v24 = vrot.slane %v1085_v11, %v873_v2  ;;  %v862_v31 = vsel %vm861_vm9, %v860_v16, %v855_v28 }
 0x2d0   :  { %v1089_v35 = vpop.eup %1088  ;;  %v881_v22 = vrot.slane %v1087_v14, %v880_v9  ;;  %v869_v34 = vsel %vm868_vm10, %v867_v19, %v862_v31 }
 0x2d1   :  { %v1091_v21 = vpop.eup %1090  ;;  %v888_v32 = vrot.slane %v1089_v35, %v887_v18  ;;  %v876_v38 = vsel %vm875_vm11, %v874_v24, %v869_v34 }
 0x2d2   :  { %v1093_v25 = vpop.eup %1092  ;;  %v895_v36 = vrot.slane %v1091_v21, %v894_v20  ;;  %v883_v40 = vsel %vm882_vm12, %v881_v22, %v876_v38 }
 0x2d3   :  { %v902_v39 = vrot.slane %v1093_v25, %v901_v27  ;;  %v890_v42 = vsel %vm889_vm13, %v888_v32, %v883_v40 }
 0x2d4   :  { %v1095_v33 = vpop.eup %1094  ;;  %v897_v44 = vsel %vm896_vm14, %v895_v36, %v890_v42 }
 0x2d5   :  { %v909_v41 = vrot.slane %v1095_v33, %v908_v6  ;;  %v904_v45 = vsel %vm903_vm15, %v902_v39, %v897_v44 }
 0x2d7   :  { %v911_v47 = vsel %vm910_vm0, %v909_v41, %v904_v45 }
 0x2d8   :  { %v1097_v43 = vpop.eup %1096 }
 0x2d9   :  { %v916_v46 = vrot.slane %v1097_v43, %v915_v17 }
 0x2db   :  { %v918_v48 = vsel %vm917_vm1, %v916_v46, %v911_v47 }
 0x2dc   :  { %920 = vst [vmem:[#allocation3] sm:$0x1] %v918_v48 }
 0x2dd   :  { %1109 = shalt.err (!%p1106_p4)
}
 0x2de   :  { %s1110_s25 = scalar_lea.hbm %s1632_s7, 16 }
 0x2df   :  { %p1111_p5 = scmp.ne.s32.totalorder %s1632_s7, %s1110_s25  ;;  %p1114_p6 = scmp.lt.u32.totalorder %s1110_s25, %s1632_s7 }
 0x2e1   :  { %p1116_p7 = pnand %p1114_p6, %p1111_p5 }
 0x2e3   :  { %1119 = shalt.err (!%p1116_p7)
}
 0x2e4   :  { %930 = dma.vmem_to_hbm [thread:$0]  %s928_s20, 16, %s1632_s7, [#allocation4]  }
 0x2e5   :  { %1120 = dma.done.wait [#allocation4], 16  }
 0x2e6   :  { %1121 = vsyncadd [#allocation4], 4294967280 }
 0x2e7   :  { %934 = vsyncpa [#allocation4], 1 }

</bundles_post_ra>
